<compile_context>
chip_gen: v5e
topology: v5e:2x2
jax: 0.10.0
libtpu: 0.0.40
codegen_flags: <defaults>
</compile_context>

<pallas_src>
import jax
import jax.numpy as jnp
from jax.experimental import pallas as pl
from jax.experimental.pallas import tpu as pltpu


def _kernel(f_ref, t_ref, y_ref, at_ref, ae_ref, o1_ref, o2_ref):
    f = f_ref[0]                                               # SMEM scalar
    c = jnp.cos(t_ref[...] * f)                                # (tm, n) f32
    # z[m, i] = sum_j y[m, j] * A[i, j]   (A passed pre-transposed -> plain dot)
    z = jnp.dot(y_ref[...], at_ref[...], preferred_element_type=jnp.float32)
    o1_ref[...] = (c * z).astype(o1_ref.dtype)
    # Lane-dense out2 slab: o2[m, i*n + j] = cos(t[m, i]*f) * A[i, j]
    o2_ref[...] = jnp.dot(
        c, ae_ref[...], preferred_element_type=jnp.float32
    ).astype(o2_ref.dtype)


def _round_up(x, m):
    return (x + m - 1) // m * m


def _tpu_vmem_capacity_bytes():
    """Physical VMEM capacity of the attached TPU (conservative fallback)."""
    try:
        cap = getattr(pltpu.get_tpu_info(), "vmem_capacity_bytes", None)
        if cap:
            return int(cap)
    except Exception:
        pass
    return 64 << 20  # assume v7x-sized VMEM if detection fails (safe choice)


def _plan_tiles(m_rows, n, tm=None, vmem_budget_bytes=None):
    """Pick the row tile `tm` and the scoped-VMEM limit for this generation."""
    cap = _tpu_vmem_capacity_bytes()
    hard_cap = (cap * 3) // 4                       # never request more scoped VMEM
    if vmem_budget_bytes is None:
        # v5e/v6e: 128 MiB physical -> generous block budget.  v7x: 64 MiB.
        vmem_budget_bytes = (40 << 20) if cap >= (128 << 20) else (14 << 20)
    budget = min(vmem_budget_bytes, hard_cap)

    m_rounded = _round_up(max(m_rows, 1), 8)
    # Per-row f32 bytes: out2 blocks (2*n*n, double-buffered) + in-kernel f32
    # MXU result for out2 (n*n) + t/y/out1 blocks (3 * 2*n) + c/z temps (2*n).
    bytes_per_row = 4 * (3 * n * n + 8 * n)
    # Grid-invariant residents, double-buffered by the default pipeline: A^T, Ae.
    resident = 4 * 2 * (n * n + n ** 3)

    if tm is None:
        # If the residents dominate the nominal budget (large n), allow growth
        # toward the hard cap so the row tile does not collapse to 8.
        avail = min(hard_cap, max(budget, 2 * resident))
        tm = max(8, ((avail - resident) // bytes_per_row) // 8 * 8)
        tm = min(tm, 2048, m_rounded)               # 2048 rows already amortizes overhead
        # v7x megacore: prefer >= 4 grid steps (>= 2 per TensorCore) whenever
        # each step still carries a healthy amount of out2 writeback.
        tm_4steps = _round_up(pl.cdiv(m_rounded, 4), 8)
        if tm_4steps >= 512:
            tm = min(tm, tm_4steps)

    footprint = resident + tm * bytes_per_row
    vmem_limit = int(min(hard_cap,
                         max(32 << 20, footprint + (8 << 20), budget + (8 << 20))))
    return tm, vmem_limit


def complex_linear_system_forward(t, y, A, f=1.0, *, tm=None,
                                  vmem_budget_bytes=None, out_dtype=None):
    """t, y: (T, B, n) float32; A: (n, n); f: python float or scalar array.

    Returns (out1: (T, B, n), out2: (T, B, n, n)) matching the PyTorch module.
    `out_dtype` (e.g. jnp.bfloat16) halves out2 writeback bytes if the
    downstream consumer tolerates it; default keeps the module's f32 semantics.
    """
    T, B, n = t.shape
    assert y.shape == (T, B, n) and A.shape == (n, n)
    M = T * B
    out_dtype = t.dtype if out_dtype is None else out_dtype

    tm, vmem_limit = _plan_tiles(M, n, tm=tm, vmem_budget_bytes=vmem_budget_bytes)

    t_flat = t.reshape(M, n)          # contiguous reshapes: no copies
    y_flat = y.reshape(M, n)

    A = A.astype(jnp.float32)
    At = A.T                          # z = y @ A^T as a plain (tm,n)@(n,n) matmul
    # "Expanded" A: Ae[i, i*n + j] = A[i, j]; cos(t*f) @ Ae is the out2 slab.
    Ae = (jnp.eye(n, dtype=jnp.float32)[:, :, None] * A[None, :, :]).reshape(n, n * n)

    f_arr = jnp.asarray(f, dtype=jnp.float32).reshape(1)

    out_itemsize = jnp.dtype(out_dtype).itemsize
    cost = pl.CostEstimate(
        flops=2 * M * n * n * (n + 1) + 2 * M * n,
        transcendentals=M * n,
        bytes_accessed=(4 * (2 * M * n + n * n + n ** 3)
                        + out_itemsize * (M * n + M * n * n)),
    )

    out1_flat, out2_flat = pl.pallas_call(
        _kernel,
        out_shape=(
            jax.ShapeDtypeStruct((M, n), out_dtype),
            jax.ShapeDtypeStruct((M, n * n), out_dtype),
        ),
        grid_spec=pltpu.PrefetchScalarGridSpec(
            num_scalar_prefetch=1,                                # f in SMEM
            grid=(pl.cdiv(M, tm),),                               # ragged edge masked
            in_specs=[
                pl.BlockSpec((tm, n), lambda i, f_ref: (i, 0)),       # t rows
                pl.BlockSpec((tm, n), lambda i, f_ref: (i, 0)),       # y rows
                pl.BlockSpec((n, n), lambda i, f_ref: (0, 0)),        # A^T (resident)
                pl.BlockSpec((n, n * n), lambda i, f_ref: (0, 0)),    # Ae (resident)
            ],
            out_specs=[
                pl.BlockSpec((tm, n), lambda i, f_ref: (i, 0)),       # out1
                pl.BlockSpec((tm, n * n), lambda i, f_ref: (i, 0)),   # out2 (lane-dense)
            ],
        ),
        compiler_params=pltpu.CompilerParams(
            dimension_semantics=("parallel",),
            vmem_limit_bytes=vmem_limit,
        ),
        cost_estimate=cost,
    )(f_arr, t_flat, y_flat, At, Ae)

    return out1_flat.reshape(T, B, n), out2_flat.reshape(T, B, n, n)


def _reference(t, y, A, f=1.0):
    c = jnp.cos(t * f)                                   # (T, B, n)
    mat = A[None, None, :, :] * c[..., None]             # (T, B, n, n)
    out1 = jnp.einsum("tbij,tbj->tbi", mat, y)
    return out1, mat


if __name__ == "__main__":
    T, B, n = 8, 2, 32
    f = 1.0

    key = jax.random.PRNGKey(0)
    k_a, k_t, k_y = jax.random.split(key, 3)

    # Parameter A ~ U[0, 1) like torch.rand((n, n)), deterministic from seed.
    A = jax.random.uniform(k_a, (n, n), dtype=jnp.float32)
    t = jax.random.uniform(k_t, (T, B, n), dtype=jnp.float32) * 2.0
    y = jax.random.normal(k_y, (T, B, n), dtype=jnp.float32)

    out1, out2 = complex_linear_system_forward(t, y, A, f)
    jax.block_until_ready((out1, out2))

    ref1, ref2 = _reference(t, y, A, f)
    assert out1.shape == (T, B, n) and out2.shape == (T, B, n, n)
    assert jnp.allclose(out1, ref1, atol=1e-5, rtol=1e-5), \
        float(jnp.max(jnp.abs(out1 - ref1)))
    assert jnp.allclose(out2, ref2, atol=1e-5, rtol=1e-5), \
        float(jnp.max(jnp.abs(out2 - ref2)))

    print("KERNEL_OK")
</pallas_src>

<mosaic_0001>
module attributes {stable_mosaic.version = 11 : i64} {
  func.func @_kernel(%arg0: i32, %arg1: memref<1xf32, #tpu.memory_space<smem>>, %arg2: memref<16x32xf32, #tpu.memory_space<vmem>>, %arg3: memref<16x32xf32, #tpu.memory_space<vmem>>, %arg4: memref<32x32xf32, #tpu.memory_space<vmem>>, %arg5: memref<32x1024xf32, #tpu.memory_space<vmem>>, %arg6: memref<16x32xf32, #tpu.memory_space<vmem>>, %arg7: memref<16x1024xf32, #tpu.memory_space<vmem>>) attributes {dimension_semantics = [#tpu.dimension_semantics<parallel>], iteration_bounds = array<i64: 1>, scalar_prefetch = 1 : i64, scratch_operands = 0 : i64, tpu.core_type = #tpu.core_type<tc>, window_params = [{transform_indices = @transform_0, window_bounds = array<i64: 16, 32>}, {transform_indices = @transform_1, window_bounds = array<i64: 16, 32>}, {pipeline_mode = #tpu.pipeline_mode<synchronous>, transform_indices = @transform_2, window_bounds = array<i64: 32, 32>}, {pipeline_mode = #tpu.pipeline_mode<synchronous>, transform_indices = @transform_3, window_bounds = array<i64: 32, 1024>}, {transform_indices = @transform_4, window_bounds = array<i64: 16, 32>}, {transform_indices = @transform_5, window_bounds = array<i64: 16, 1024>}]} {
    %c0 = arith.constant 0 : index
    %0 = memref.load %arg1[%c0] : memref<1xf32, #tpu.memory_space<smem>>
    %c0_0 = arith.constant 0 : index
    %c0_1 = arith.constant 0 : index
    %1 = vector.load %arg2[%c0_0, %c0_1] : memref<16x32xf32, #tpu.memory_space<vmem>>, vector<16x32xf32>
    %2 = vector.broadcast %0 : f32 to vector<16x32xf32>
    %3 = arith.mulf %1, %2 : vector<16x32xf32>
    %4 = math.cos %3 : vector<16x32xf32>
    %c0_2 = arith.constant 0 : index
    %c0_3 = arith.constant 0 : index
    %5 = vector.load %arg3[%c0_2, %c0_3] : memref<16x32xf32, #tpu.memory_space<vmem>>, vector<16x32xf32>
    %c0_4 = arith.constant 0 : index
    %c0_5 = arith.constant 0 : index
    %6 = vector.load %arg4[%c0_4, %c0_5] : memref<32x32xf32, #tpu.memory_space<vmem>>, vector<32x32xf32>
    %cst = arith.constant dense<0.000000e+00> : vector<16x32xf32>
    %7 = tpu.matmul %5, %6, %cst {dimension_numbers = #tpu.dot_dimension_numbers<[1], [0], [0], [1], [0, 0, 1, 1], [], []>} : vector<16x32xf32>, vector<32x32xf32>, vector<16x32xf32> -> vector<16x32xf32>
    %8 = arith.mulf %4, %7 : vector<16x32xf32>
    %c0_6 = arith.constant 0 : index
    %c0_7 = arith.constant 0 : index
    %9 = vector.load %arg6[%c0_6, %c0_7] : memref<16x32xf32, #tpu.memory_space<vmem>>, vector<16x32xf32>
    tpu.vector_store %arg6[%c0_6, %c0_7], %8 {strides = array<i32>} : memref<16x32xf32, #tpu.memory_space<vmem>>, vector<16x32xf32>,
    %c0_8 = arith.constant 0 : index
    %c0_9 = arith.constant 0 : index
    %10 = vector.load %arg5[%c0_8, %c0_9] : memref<32x1024xf32, #tpu.memory_space<vmem>>, vector<32x1024xf32>
    %cst_10 = arith.constant dense<0.000000e+00> : vector<16x1024xf32>
    %11 = tpu.matmul %4, %10, %cst_10 {dimension_numbers = #tpu.dot_dimension_numbers<[1], [0], [0], [1], [0, 0, 1, 1], [], []>} : vector<16x32xf32>, vector<32x1024xf32>, vector<16x1024xf32> -> vector<16x1024xf32>
    %c0_11 = arith.constant 0 : index
    %c0_12 = arith.constant 0 : index
    %12 = vector.load %arg7[%c0_11, %c0_12] : memref<16x1024xf32, #tpu.memory_space<vmem>>, vector<16x1024xf32>
    tpu.vector_store %arg7[%c0_11, %c0_12], %11 {strides = array<i32>} : memref<16x1024xf32, #tpu.memory_space<vmem>>, vector<16x1024xf32>,
    return
  }
  func.func @transform_0(%arg0: i32, %arg1: memref<1xf32, #tpu.memory_space<smem>>) -> (i32, i32) {
    %c0_i32 = arith.constant 0 : i32
    %c0_i32_0 = arith.constant 0 : i32
    return %arg0, %c0_i32 : i32, i32
  }
  func.func @transform_1(%arg0: i32, %arg1: memref<1xf32, #tpu.memory_space<smem>>) -> (i32, i32) {
    %c0_i32 = arith.constant 0 : i32
    %c0_i32_0 = arith.constant 0 : i32
    return %arg0, %c0_i32 : i32, i32
  }
  func.func @transform_2(%arg0: i32, %arg1: memref<1xf32, #tpu.memory_space<smem>>) -> (i32, i32) {
    %c0_i32 = arith.constant 0 : i32
    %c0_i32_0 = arith.constant 0 : i32
    %c0_i32_1 = arith.constant 0 : i32
    return %c0_i32, %c0_i32_0 : i32, i32
  }
  func.func @transform_3(%arg0: i32, %arg1: memref<1xf32, #tpu.memory_space<smem>>) -> (i32, i32) {
    %c0_i32 = arith.constant 0 : i32
    %c0_i32_0 = arith.constant 0 : i32
    %c0_i32_1 = arith.constant 0 : i32
    return %c0_i32, %c0_i32_0 : i32, i32
  }
  func.func @transform_4(%arg0: i32, %arg1: memref<1xf32, #tpu.memory_space<smem>>) -> (i32, i32) {
    %c0_i32 = arith.constant 0 : i32
    %c0_i32_0 = arith.constant 0 : i32
    return %arg0, %c0_i32 : i32, i32
  }
  func.func @transform_5(%arg0: i32, %arg1: memref<1xf32, #tpu.memory_space<smem>>) -> (i32, i32) {
    %c0_i32 = arith.constant 0 : i32
    %c0_i32_0 = arith.constant 0 : i32
    return %arg0, %c0_i32 : i32, i32
  }
}

</mosaic_0001>

<bundles_post_ra>
// kernel: tpu_custom_call.1
= control target key start
LH: loop header
LB: loop body
LE: loop exit
PB: predicated region body
PF: predicated region fallthrough
CT: control target
= control target key end

     0   :  { %13 = vsyncpa [#allocation5], 0  ;;  %s1212_s0 = inlined_call_operand.<no memory space> [shape: f32[1], index: 0, kind: input, shape index: {}]   ;;  %s1213_s1 = inlined_call_operand.hbm [shape: f32[16,32], index: 1, kind: input, shape index: {}]   ;;  %s1214_s2 = inlined_call_operand.hbm [shape: f32[16,32], index: 2, kind: input, shape index: {}]   ;;  %s1215_s3 = inlined_call_operand.hbm [shape: f32[32,32], index: 3, kind: input, shape index: {}]   ;;  %s1216_s4 = inlined_call_operand.hbm [shape: f32[32,1024], index: 4, kind: input, shape index: {}]   ;;  %s1217_s5 = inlined_call_operand.hbm [shape: f32[16,32], index: 5, kind: output, shape index: {0}]   ;;  %s1218_s6 = inlined_call_operand.hbm [shape: f32[16,1024], index: 6, kind: output, shape index: {1}]  }
   0x1   :  { %14 = vsyncpa [#allocation8], 0 }
   0x2   :  { %15 = vsyncpa [#allocation11], 0 }
   0x3   :  { %16 = vsyncpa [#allocation6], 0 }
   0x4   :  { %17 = vsyncpa [#allocation14], 0  ;;  %s35_s23 = sshll.u32 %s1214_s2, 4  ;;  %s916_s24 = smov [#allocation7]   ;;  %s36_s23 = int_to_ptr.hbm [resolvable:$true] %s35_s23 }
   0x5   :  { %s37_s25 = sshll.u32 %s916_s24, 4  ;;  %s22_s28 = sshll.u32 %s1213_s1, 4  ;;  %s38_s25 = int_to_ptr.vmem [resolvable:$true] %s37_s25  ;;  %s23_s28 = int_to_ptr.hbm [resolvable:$true] %s22_s28 }
   0x6   :  { %s917_s29 = smov 128   ;;  %s918_s30 = smov 8  }
   0x7   :  { %43 = dma.hbm_to_vmem [thread:$0]  %s36_s23, 256, %s38_s25, [#allocation8], %s917_s29, %s917_s29, %s918_s30  }
   0x8   :  { %s919_s7 = smov [#allocation4]   ;;  %s48_s2 = sshll.u32 %s1215_s3, 4  ;;  %s49_s2 = int_to_ptr.hbm [resolvable:$true] %s48_s2 }
   0x9   :  { %s24_s8 = sshll.u32 %s919_s7, 4  ;;  %s61_s12 = sshll.u32 %s1216_s4, 4  ;;  %s25_s8 = int_to_ptr.vmem [resolvable:$true] %s24_s8  ;;  %s62_s12 = int_to_ptr.hbm [resolvable:$true] %s61_s12 }
   0xa   :  { %30 = dma.hbm_to_vmem [thread:$0]  %s23_s28, 256, %s25_s8, [#allocation5], %s917_s29, %s917_s29, %s918_s30  }
   0xb   :  { %s920_s13 = smov [#allocation9]   ;;  %s921_s15 = smov [#allocation10]  }
   0xc   :  { %s50_s14 = sshll.u32 %s920_s13, 4  ;;  %s63_s3 = sshll.u32 %s921_s15, 4  ;;  %s51_s14 = int_to_ptr.vmem [resolvable:$true] %s50_s14  ;;  %s64_s3 = int_to_ptr.vmem [resolvable:$true] %s63_s3 }
   0xd   :  { %56 = dma.hbm_to_vmem [thread:$0]  %s49_s2, 512, %s51_s14, [#allocation8], %s917_s29, %s917_s29, %s918_s30  }
   0xe   :  { %s922_s16 = smov 1024   ;;  %s923_s17 = smov 64  }
   0xf   :  { %69 = dma.hbm_to_vmem [thread:$0]  %s62_s12, 4096, %s64_s3, [#allocation11], %s922_s16, %s922_s16, %s923_s17  }
  0x10   :  { %906 = dma.done.wait [#allocation5], 256  }
  0x11   :  { %907 = vsyncadd [#allocation5], 4294967040 }
  0x12   :  { %908 = dma.done.wait [#allocation8], 768  }
  0x13   :  { %909 = vsyncadd [#allocation8], 4294966528 }
  0x14   :  { %910 = dma.done.wait [#allocation11], 4096  }
  0x15   :  { %911 = vsyncadd [#allocation11], 4294963200  ;;  %v405_v0 = vld [vmem:[#allocation9 + $0x18] sm:$0xff]  ;;  %v404_v1 = vld [vmem:[#allocation9 + $0x10] sm:$0xff]  ;;  %v89_v9 = vstv %s1212_s0  ;;  %vm406_vm0 = vcmask 261120   ;;  %s931_s0 = smov [#allocation12]  }
  0x16   :  { %v465_v2 = vld [vmem:[#allocation10 + $0xc8] sm:$0xff]  ;;  %425 = vmatpush.msra.mxu0 %v405_v0  ;;  %741 = vmatpush.msra.mxu1 %v405_v0  ;;  %v466_v3 = vld [vmem:[#allocation10 + $0xd0] sm:$0xff]  ;;  %v402_v10 = vld [vmem:[#allocation9] sm:$0xff]  ;;  %v924_v43 = vmov 683565275   ;;  %s682_s19 = sshll.u32 %s931_s0, 4  ;;  %s683_s19 = int_to_ptr.vmem [resolvable:$true] %s682_s19 }
  0x17   :  { %v457_v4 = vld [vmem:[#allocation10 + $0x88] sm:$0xff]  ;;  %513 = vmatpush.msra.mxu2 %v465_v2  ;;  %536 = vmatpush.msra.mxu3 %v466_v3  ;;  %v458_v6 = vld [vmem:[#allocation10 + $0x90] sm:$0xff]  ;;  %v401_v12 = vld [vmem:[#allocation7 + $0x8] sm:$0xff]  ;;  %v925_v45 = vmov 2475754826   ;;  %s684_s22 = sshll.u32 %s1217_s5, 4  ;;  %s685_s22 = int_to_ptr.hbm [resolvable:$true] %s684_s22 }
  0x18   :  { %v403_v5 = vld [vmem:[#allocation9 + $0x8] sm:$0xff]  ;;  %426 = vmatpush.msra.mxu0 %v404_v1  ;;  %742 = vmatpush.msra.mxu1 %v404_v1  ;;  %v450_v8 = vld [vmem:[#allocation10 + $0x50] sm:$0xff]  ;;  %v87_v13 = vld [vmem:[#allocation4] sm:$0xff]  ;;  %v926_v47 = vmov 2131351028   ;;  %s932_s5 = smov [#allocation13]  }
  0x19   :  { %v449_v7 = vld [vmem:[#allocation10 + $0x48] sm:$0xff]  ;;  %514 = vmatpush.msra.mxu2 %v457_v4  ;;  %537 = vmatpush.msra.mxu3 %v458_v6  ;;  %v400_v11 = vld [vmem:[#allocation7] sm:$0xff]  ;;  %v464_v14 = vld [vmem:[#allocation10 + $0xc0] sm:$0xff]  ;;  %v995_v16 = vmul.f32 %v89_v9, %v87_v13  ;;  %v927_v49 = vmov 2102212464   ;;  %s695_s23 = sshll.u32 %s932_s5, 4  ;;  %s696_s23 = int_to_ptr.vmem [resolvable:$true] %s695_s23 }
  0x1a   :  { %427 = vmatpush.msra.mxu0 %v403_v5  ;;  %743 = vmatpush.msra.mxu1 %v403_v5  ;;  %v467_v15 = vld [vmem:[#allocation10 + $0xd8] sm:$0xff]  ;;  %v88_v17 = vld [vmem:[#allocation4 + $0x8] sm:$0xff]  ;;  %v442_v19 = vld [vmem:[#allocation10 + $0x10] sm:$0xff]  ;;  %v928_v51 = vmov 920167782   ;;  %s697_s26 = sshll.u32 %s1218_s6, 4  ;;  %s698_s26 = int_to_ptr.hbm [resolvable:$true] %s697_s26 }
  0x1b   :  { %515 = vmatpush.msra.mxu2 %v449_v7  ;;  %538 = vmatpush.msra.mxu3 %v450_v8  ;;  %v441_v18 = vld [vmem:[#allocation10 + $0x8] sm:$0xff]  ;;  %v997_v20 = vmul.f32 %v89_v9, %v88_v17  ;;  %v456_v21 = vld [vmem:[#allocation10 + $0x80] sm:$0xff]  ;;  %v92_v22 = vand.u32 2147483647, %v995_v16  ;;  %v95_v23 = vand.u32 2139095040, %v995_v16 }
  0x1c   :  { %428 = vmatpush.msra.mxu0 %v402_v10  ;;  %744 = vmatpush.msra.mxu1 %v402_v10  ;;  %v929_v60 = vmov 1326507024  }
  0x1d   :  { %723 = vmatmul.msk.f32.vlgmr.msra.gmra.mxu0 %vm406_vm0, %v400_v11  ;;  %724 = vmatmul.msk.f32.vlgmr.msra.gmra.mxu1 %vm406_vm0, %v401_v12  ;;  %v246_v24 = vand.u32 2147483647, %v997_v20  ;;  %v249_v25 = vand.u32 2139095040, %v997_v20  ;;  %v96_v26 = vshrl.u32 %v95_v23, 23  ;;  %v99_v27 = vand.u32 8388607, %v92_v22 }
  0x1e   :  { %490 = vmatpush.msrb.mxu1 %v464_v14  ;;  %559 = vmatpush.msrb.mxu0 %v467_v15 }
  0x1f   :  { %516 = vmatpush.msra.mxu2 %v441_v18  ;;  %539 = vmatpush.msra.mxu3 %v442_v19  ;;  %v250_v28 = vshrl.u32 %v249_v25, 23  ;;  %v717_v29 = vadd.s32 4294967169, %v96_v26  ;;  %v100_v30 = vor.u32 8388608, %v99_v27  ;;  %v253_v32 = vand.u32 8388607, %v246_v24 }
  0x20   :  { %491 = vmatpush.msrb.mxu1 %v456_v21 }
  0x21   :  { %v720_v31 = vadd.s32 4294967169, %v250_v28  ;;  %v102_v33 = vadd.s32 1, %v717_v29  ;;  %v1009_v36 = vshll.u32 %v100_v30, 8  ;;  %v254_v37 = vor.u32 8388608, %v253_v32 }
  0x23   :  { %v256_v34 = vadd.s32 1, %v720_v31  ;;  %vm103_vm1 = vcmp.gt.s32.totalorder %v102_v33, 0  ;;  %v141_v53 = vand.u32 65535, %v1009_v36  ;;  %v1019_v54 = vshll.u32 %v254_v37, 8 }
  0x24   :  { %v104_v35 = vsel %vm103_vm1, %v102_v33, 0  ;;  %v142_v58 = vshrl.u32 %v1009_v36, 16 }
  0x25   :  { %vm257_vm2 = vcmp.gt.s32.totalorder %v256_v34, 0  ;;  %v106_v38 = vand.u32 31, %v104_v35  ;;  %v1011_v40 = vshrl.u32 %v104_v35, 5 }
  0x26   :  { %v258_v39 = vsel %vm257_vm2, %v256_v34, 0 }
  0x27   :  { %v1013_v41 = vand.u32 31, %v258_v39  ;;  %v107_v42 = vsub.s32 32, %v106_v38  ;;  %v109_v44 = vshll.u32 %v924_v43, %v106_v38  ;;  %v112_v46 = vshll.u32 %v925_v45, %v106_v38 }
  0x28   :  { %v115_v48 = vshll.u32 %v926_v47, %v106_v38  ;;  %v118_v50 = vshll.u32 %v927_v49, %v106_v38  ;;  %v121_v52 = vshll.u32 %v928_v51, %v106_v38  ;;  %vm124_vm3 = vcmp.lt.s32.totalorder %v1011_v40, 1 }
  0x29   :  { %v110_v55 = vshrl.u32 %v925_v45, %v107_v42  ;;  %v113_v56 = vshrl.u32 %v926_v47, %v107_v42  ;;  %v116_v57 = vshrl.u32 %v927_v49, %v107_v42  ;;  %v119_v59 = vshrl.u32 %v928_v51, %v107_v42 }
  0x2a   :  { %v122_v61 = vshrl.u32 %v929_v60, %v107_v42  ;;  %vm127_vm4 = vcmp.lt.s32.totalorder %v1011_v40, 4  ;;  %v1028_v1 = vsub.s32 32, %v1013_v41  ;;  %v108_v2 = vshrl.u32 %v924_v43, %v107_v42 }
  0x2b   :  { %v111_v62 = vor.u32 %v110_v55, %v109_v44  ;;  %v114_v63 = vor.u32 %v113_v56, %v112_v46  ;;  %v117_v0 = vor.u32 %v116_v57, %v115_v48  ;;  %v120_v3 = vor.u32 %v119_v59, %v118_v50 }
  0x2c   :  { %v123_v4 = vor.u32 %v122_v61, %v121_v52  ;;  %vm126_vm5 = vcmp.lt.s32.totalorder %v1011_v40, 3  ;;  %vm125_vm6 = vcmp.lt.s32.totalorder %v1011_v40, 2  ;;  %v1037_v7 = vshrl.u32 %v258_v39, 5 }
  0x2d   :  { %v132_v5 = vsel %vm124_vm3, %v111_v62, %v114_v63  ;;  %v136_v6 = vsel %vm124_vm3, %v114_v63, %v117_v0  ;;  %v133_v8 = vsel %vm127_vm4, %v120_v3, 920167782  ;;  %v263_v10 = vshll.u32 %v924_v43, %v1013_v41 }
  0x2e   :  { %v137_v9 = vsel %vm127_vm4, %v123_v4, 1326507024  ;;  %v266_v11 = vshll.u32 %v925_v45, %v1013_v41  ;;  %v129_v12 = vsel %vm127_vm4, %v117_v0, 2102212464  ;;  %v134_v13 = vsel %vm126_vm5, %v117_v0, %v133_v8 }
  0x2f   :  { %v138_v14 = vsel %vm126_vm5, %v120_v3, %v137_v9  ;;  %v264_v15 = vshrl.u32 %v925_v45, %v1028_v1  ;;  %v128_v17 = vsel %vm124_vm3, %v108_v2, %v111_v62  ;;  %v135_v18 = vsel %vm125_vm6, %v132_v5, %v134_v13 }
  0x30   :  { %v139_v19 = vsel %vm125_vm6, %v136_v6, %v138_v14  ;;  %v267_v21 = vshrl.u32 %v926_v47, %v1028_v1  ;;  %v165_v26 = vand.u32 65535, %v135_v18  ;;  %v166_v27 = vshrl.u32 %v135_v18, 16 }
  0x31   :  { %v143_v23 = vand.u32 65535, %v139_v19  ;;  %v144_v25 = vshrl.u32 %v139_v19, 16  ;;  %v130_v28 = vsel %vm126_vm5, %v114_v63, %v129_v12  ;;  %v1062_v29 = vor.u32 %v264_v15, %v263_v10 }
  0x32   :  { %v1064_v30 = vor.u32 %v267_v21, %v266_v11  ;;  %v269_v31 = vshll.u32 %v926_v47, %v1013_v41  ;;  %v270_v35 = vshrl.u32 %v927_v49, %v1028_v1  ;;  %v167_v38 = vmul.u32 %v165_v26, %v141_v53 }
  0x33   :  { %v145_v32 = vmul.u32 %v143_v23, %v141_v53  ;;  %v146_v33 = vmul.u32 %v144_v25, %v141_v53  ;;  %v147_v34 = vmul.u32 %v143_v23, %v142_v58  ;;  %v148_v37 = vmul.u32 %v144_v25, %v142_v58 }
  0x34   :  { %v168_v39 = vmul.u32 %v166_v27, %v141_v53  ;;  %v169_v42 = vmul.u32 %v165_v26, %v142_v58  ;;  %v170_v48 = vmul.u32 %v166_v27, %v142_v58  ;;  %v272_v59 = vshll.u32 %v927_v49, %v1013_v41 }
  0x35   :  { %v149_v44 = vshll.u32 %v146_v33, 16  ;;  %v150_v45 = vshrl.u32 %v146_v33, 16  ;;  %v151_v46 = vshll.u32 %v147_v34, 16  ;;  %v152_v50 = vshrl.u32 %v147_v34, 16 }
  0x36   :  { %v171_v52 = vshll.u32 %v168_v39, 16  ;;  %v172_v55 = vshrl.u32 %v168_v39, 16  ;;  %v173_v56 = vshll.u32 %v169_v42, 16  ;;  %v174_v57 = vshrl.u32 %v169_v42, 16 }
  0x37   :  { %vm153_vm7 = vc.u32 %v145_v32, %v149_v44  ;;  %v155_v47 = vadd.s32 %v149_v44, %v145_v32  ;;  %v930_v61 = vmov 0   ;;  %v273_v63 = vshrl.u32 %v928_v51, %v1028_v1 }
  0x38   :  { %v154_v62 = vsel %vm153_vm7, 1, %v930_v61  ;;  %vm175_vm8 = vc.u32 %v167_v38, %v171_v52  ;;  %v177_v53 = vadd.s32 %v171_v52, %v167_v38  ;;  %v275_v2 = vshll.u32 %v928_v51, %v1013_v41 }
  0x39   :  { %v156_v0 = vadd.s32 %v154_v62, %v148_v37  ;;  %vm157_vm9 = vc.u32 %v155_v47, %v151_v46  ;;  %v176_v58 = vsel %vm175_vm8, 1, %v930_v61  ;;  %v271_v49 = vor.u32 %v270_v35, %v269_v31 }
  0x3a   :  { %v158_v3 = vsel %vm157_vm9, 1, %v930_v61  ;;  %v178_v4 = vadd.s32 %v176_v58, %v170_v48  ;;  %vm179_vm10 = vc.u32 %v177_v53, %v173_v56  ;;  %v274_v8 = vor.u32 %v273_v63, %v272_v59 }
  0x3b   :  { %v160_v5 = vadd.s32 %v158_v3, %v156_v0  ;;  %v180_v6 = vsel %vm179_vm10, 1, %v930_v61  ;;  %v276_v9 = vshrl.u32 %v929_v60, %v1028_v1  ;;  %v1081_v10 = vadd.s32 %v177_v53, %v173_v56 }
  0x3c   :  { %v182_v11 = vadd.s32 %v180_v6, %v178_v4  ;;  %vm278_vm11 = vcmp.lt.s32.totalorder %v1037_v7, 1  ;;  %vm280_vm12 = vcmp.lt.s32.totalorder %v1037_v7, 3  ;;  %vm279_vm13 = vcmp.lt.s32.totalorder %v1037_v7, 2 }
  0x3d   :  { %v161_v41 = vadd.s32 %v160_v5, %v150_v45  ;;  %v277_v51 = vor.u32 %v276_v9, %v275_v2  ;;  %vm281_vm14 = vcmp.lt.s32.totalorder %v1037_v7, 4  ;;  %v131_v12 = vsel %vm125_vm6, %v128_v17, %v130_v28 }
  0x3e   :  { %v183_v13 = vadd.s32 %v182_v11, %v172_v55  ;;  %v286_v60 = vsel %vm278_vm11, %v1062_v29, %v1064_v30  ;;  %v287_v14 = vsel %vm281_vm14, %v274_v8, 920167782  ;;  %v290_v19 = vsel %vm278_vm11, %v1064_v30, %v271_v49 }
  0x3f   :  { %v1095_v15 = vadd.s32 %v161_v41, %v152_v50  ;;  %v288_v18 = vsel %vm280_vm12, %v271_v49, %v287_v14  ;;  %v296_v40 = vshrl.u32 %v1019_v54, 16  ;;  %v291_v23 = vsel %vm281_vm14, %v277_v51, 1326507024 }
  0x40   :  { %v184_v17 = vadd.s32 %v183_v13, %v174_v57  ;;  %v289_v21 = vsel %vm279_vm13, %v286_v60, %v288_v18  ;;  %v295_v25 = vand.u32 65535, %v1019_v54  ;;  %v185_v26 = vmul.u32 %v1009_v36, %v131_v12 }
  0x41   :  { %vm187_vm15 = vc.u32 %v1095_v15, %v1081_v10  ;;  %v292_v27 = vsel %vm280_vm12, %v274_v8, %v291_v23  ;;  %v319_v28 = vand.u32 65535, %v289_v21  ;;  %v320_v33 = vshrl.u32 %v289_v21, 16 }
  0x42   :  { %v188_v31 = vadd.s32 1, %v184_v17  ;;  %v293_v32 = vsel %vm279_vm13, %v290_v19, %v292_v27  ;;  %v262_v59 = vshrl.u32 %v924_v43, %v1028_v1  ;;  %v283_v58 = vsel %vm281_vm14, %v271_v49, 2102212464 }
  0x43   :  { %v297_v34 = vand.u32 65535, %v293_v32  ;;  %v298_v35 = vshrl.u32 %v293_v32, 16  ;;  %v323_v37 = vmul.u32 %v319_v28, %v296_v40  ;;  %v321_v39 = vmul.u32 %v319_v28, %v295_v25 }
  0x44   :  { %v189_v38 = vsel %vm187_vm15, %v188_v31, %v184_v17  ;;  %v322_v42 = vmul.u32 %v320_v33, %v295_v25  ;;  %v324_v48 = vmul.u32 %v320_v33, %v296_v40  ;;  %v282_v43 = vsel %vm278_vm11, %v262_v59, %v1062_v29  ;;  %v468_v59 = vld [vmem:[#allocation10 + $0xe0] sm:$0xff] }
  0x45   :  { %v190_v44 = vadd.s32 %v189_v38, %v185_v26  ;;  %v299_v36 = vmul.u32 %v297_v34, %v295_v25  ;;  %v300_v45 = vmul.u32 %v298_v35, %v295_v25  ;;  %v301_v46 = vmul.u32 %v297_v34, %v296_v40 }
  0x46   :  { %v325_v50 = vshll.u32 %v322_v42, 16  ;;  %v327_v52 = vshll.u32 %v323_v37, 16  ;;  %v302_v56 = vmul.u32 %v298_v35, %v296_v40  ;;  %v326_v8 = vshrl.u32 %v322_v42, 16  ;;  %v459_v42 = vld [vmem:[#allocation10 + $0x98] sm:$0xff] }
  0x47   :  { %v191_v55 = vadd.s32 536870912, %v190_v44  ;;  %v303_v47 = vshll.u32 %v300_v45, 16  ;;  %v305_v57 = vshll.u32 %v301_v46, 16  ;;  %v304_v5 = vshrl.u32 %v300_v45, 16  ;;  %560 = vmatpush.msrb.mxu0 %v459_v42 }
  0x48   :  { %vm329_vm1 = vc.u32 %v321_v39, %v325_v50  ;;  %v331_v62 = vadd.s32 %v325_v50, %v321_v39  ;;  %v284_v49 = vsel %vm280_vm12, %v1064_v30, %v283_v58  ;;  %v306_v41 = vshrl.u32 %v301_v46, 16  ;;  %v448_v46 = vld [vmem:[#allocation10 + $0x40] sm:$0xff] }
  0x49   :  { %v1117_v53 = vshrl.u32 %v191_v55, 30  ;;  %vm307_vm2 = vc.u32 %v299_v36, %v303_v47  ;;  %v309_v63 = vadd.s32 %v303_v47, %v299_v36  ;;  %v330_v0 = vsel %vm329_vm1, 1, %v930_v61  ;;  %v470_v36 = vld [vmem:[#allocation10 + $0xf0] sm:$0xff]  ;;  %v440_v50 = vld [vmem:[#allocation10] sm:$0xff]  ;;  %492 = vmatpush.msrb.mxu1 %v448_v46  ;;  %v461_v55 = vld [vmem:[#allocation10 + $0xa8] sm:$0xff] }
  0x4a   :  { %v308_v2 = vsel %vm307_vm2, 1, %v930_v61  ;;  %v332_v3 = vadd.s32 %v330_v0, %v324_v48  ;;  %vm333_vm3 = vc.u32 %v331_v62, %v327_v52  ;;  %v328_v12 = vshrl.u32 %v323_v37, 16  ;;  %v451_v48 = vld [vmem:[#allocation10 + $0x58] sm:$0xff]  ;;  %628 = vmatpush.msrb.mxu3 %v470_v36 }
  0x4b   :  { %v193_v4 = vshll.u32 %v1117_v53, 30  ;;  %v310_v6 = vadd.s32 %v308_v2, %v302_v56  ;;  %vm311_vm4 = vc.u32 %v309_v63, %v305_v57  ;;  %v334_v9 = vsel %vm333_vm3, 1, %v930_v61  ;;  %v462_v56 = vld [vmem:[#allocation10 + $0xb0] sm:$0xff]  ;;  %561 = vmatpush.msrb.mxu0 %v451_v48  ;;  %493 = vmatpush.msrb.mxu1 %v440_v50 }
  0x4c   :  { %v312_v1 = vsel %vm311_vm4, 1, %v930_v61  ;;  %v336_v13 = vadd.s32 %v334_v9, %v332_v3  ;;  %v1132_v18 = vadd.s32 %v331_v62, %v327_v52  ;;  %v285_v29 = vsel %vm279_vm13, %v282_v43, %v284_v49  ;;  %v443_v52 = vld [vmem:[#allocation10 + $0x18] sm:$0xff]  ;;  %629 = vmatpush.msrb.mxu3 %v462_v56 }
  0x4d   :  { %v194_v11 = vsub.s32 %v190_v44, %v193_v4  ;;  %v314_v51 = vadd.s32 %v312_v1, %v310_v6  ;;  %v339_v23 = vmul.u32 %v1019_v54, %v285_v29  ;;  %v186_v26 = vadd.s32 %v1081_v10, %v1095_v15  ;;  %v469_v44 = vld [vmem:[#allocation10 + $0xe8] sm:$0xff]  ;;  %v471_v62 = vld [vmem:[#allocation10 + $0xf8] sm:$0xff]  ;;  %562 = vmatpush.msrb.mxu0 %v443_v52  ;;  %v444_v52 = vld [vmem:[#allocation10 + $0x20] sm:$0xff] }
  0x4e   :  { %v337_v19 = vadd.s32 %v336_v13, %v326_v8  ;;  %605 = vmatpush.msrb.mxu2 %v469_v44  ;;  %582 = vmatpush.msra.mxu1 %v468_v59  ;;  %vm94_vm9 = vcmp.lt.s32.totalorder %v995_v16, 0  ;;  %vm1146_vm10 = vcmp.le.f32.partialorder %v92_v22, 0.7853982  ;;  %v216_v43 = vsub.s32 4, %v1117_v53 }
  0x4f   :  { %vm195_vm5 = vcmp.lt.s32.totalorder %v194_v11, 0  ;;  %v196_v60 = vsub.s32 0, %v194_v11  ;;  %v315_v14 = vadd.s32 %v314_v51, %v304_v5  ;;  %651 = vmatpush.msra.mxu0 %v471_v62  ;;  %vm248_vm13 = vcmp.lt.s32.totalorder %v997_v20, 0 }
  0x50   :  { %v338_v21 = vadd.s32 %v337_v19, %v328_v12  ;;  %606 = vmatpush.msrb.mxu2 %v461_v55  ;;  %v217_v12 = vsel %vm94_vm9, %v216_v43, %v1117_v53  ;;  %v460_v53 = vld [vmem:[#allocation10 + $0xa0] sm:$0xff]  ;;  %vm1165_vm15 = vcmp.le.f32.partialorder %v246_v24, 0.7853982  ;;  %v447_v55 = vld [vmem:[#allocation10 + $0x38] sm:$0xff]  ;;  %vm235_vm2 = vweird.f32 %v995_v16 }
  0x51   :  { %v197_v40 = vsel %vm195_vm5, %v196_v60, %v194_v11  ;;  %v316_v61 = vadd.s32 %v315_v14, %v306_v41  ;;  %583 = vmatpush.msra.mxu1 %v460_v53 }
  0x52   :  { %v198_v17 = vclz %v197_v40  ;;  %v342_v25 = vadd.s32 1, %v338_v21  ;;  %v219_v40 = vsel %vm1146_vm10, 0, %v217_v12 }
  0x53   :  { %vm341_vm6 = vc.u32 %v316_v61, %v1132_v18  ;;  %v340_v9 = vadd.s32 %v1132_v18, %v316_v61 }
  0x54   :  { %v718_v30 = vadd.s32 4294967294, %v198_v17  ;;  %v343_v27 = vsel %vm341_vm6, %v342_v25, %v338_v21  ;;  %v453_v25 = vld [vmem:[#allocation10 + $0x68] sm:$0xff]  ;;  %vm389_vm6 = vweird.f32 %v997_v20 }
  0x55   :  { %v344_v31 = vadd.s32 %v343_v27, %v339_v23  ;;  %v236_v27 = vand.u32 3, %v219_v40  ;;  %607 = vmatpush.msrb.mxu2 %v453_v25 }
  0x56   :  { %vm719_vm7 = vcmp.lt.s32.totalorder %v718_v30, 0 }
  0x57   :  { %v201_v28 = vsel %vm719_vm7, 0, %v718_v30  ;;  %v345_v34 = vadd.s32 536870912, %v344_v31  ;;  %vm241_vm12 = vcmp.eq.s32.totalorder %v236_v27, 2  ;;  %vm238_vm14 = vcmp.eq.s32.totalorder %v236_v27, 0 }
  0x58   :  { %v202_v7 = vsub.s32 32, %v201_v28  ;;  %v203_v32 = vshll.u32 %v194_v11, %v201_v28  ;;  %v206_v33 = vsub.s32 4294967266, %v201_v28  ;;  %vm237_vm1 = vcmp.lt.s32.totalorder %v236_v27, 2 }
  0x59   :  { %v1140_v38 = vshrl.u32 %v345_v34, 30 }
  0x5a   :  { %v204_v35 = vshrl.u32 %v186_v26, %v202_v7  ;;  %v207_v37 = vadd.s32 127, %v206_v33  ;;  %v454_v26 = vld [vmem:[#allocation10 + $0x70] sm:$0xff]  ;;  %v463_v7 = vld [vmem:[#allocation10 + $0xb8] sm:$0xff] }
  0x5b   :  { %v347_v45 = vshll.u32 %v1140_v38, 30  ;;  %630 = vmatpush.msrb.mxu3 %v454_v26  ;;  %652 = vmatpush.msra.mxu0 %v463_v7 }
  0x5c   :  { %v205_v54 = vor.u32 %v204_v35, %v203_v32  ;;  %v208_v39 = vshll.u32 %v207_v37, 23  ;;  %v445_v32 = vld [vmem:[#allocation10 + $0x28] sm:$0xff]  ;;  %v446_v35 = vld [vmem:[#allocation10 + $0x30] sm:$0xff]  ;;  %v452_v37 = vld [vmem:[#allocation10 + $0x60] sm:$0xff] }
  0x5d   :  { %v348_v47 = vsub.s32 %v344_v31, %v347_v45  ;;  %608 = vmatpush.msrb.mxu2 %v445_v32  ;;  %631 = vmatpush.msrb.mxu3 %v446_v35 }
  0x5e   :  { %v209_v10 = vor.u32 4788187, %v208_v39  ;;  %v212_v15 = vcvt.s32.f32 %v205_v54  ;;  %v455_v54 = vld [vmem:[#allocation10 + $0x78] sm:$0xff]  ;;  %584 = vmatpush.msra.mxu1 %v452_v37 }
  0x5f   :  { %vm349_vm8 = vcmp.lt.s32.totalorder %v348_v47, 0  ;;  %v350_v63 = vsub.s32 0, %v348_v47  ;;  %653 = vmatpush.msra.mxu0 %v455_v54 }
  0x60   :  { %v210_v57 = vand.u32 2147483647, %v209_v10  ;;  %585 = vmatpush.msra.mxu1 %v444_v52 }
  0x61   :  { %v351_v58 = vsel %vm349_vm8, %v350_v63, %v348_v47  ;;  %654 = vmatpush.msra.mxu0 %v447_v55 }
  0x62   :  { %v213_v0 = vmul.f32 %v212_v15, %v210_v57  ;;  %v352_v4 = vclz %v351_v58  ;;  %v370_v57 = vsub.s32 4, %v1140_v38 }
  0x64   :  { %v214_v3 = vxor.u32 2147483648, %v213_v0  ;;  %v721_v6 = vadd.s32 4294967294, %v352_v4  ;;  %v371_v58 = vsel %vm248_vm13, %v370_v57, %v1140_v38 }
  0x65   :  { %v373_v4 = vsel %vm1165_vm15, 0, %v371_v58 }
  0x66   :  { %v215_v5 = vsel %vm94_vm9, %v214_v3, %v213_v0  ;;  %vm722_vm11 = vcmp.lt.s32.totalorder %v721_v6, 0 }
  0x67   :  { %v218_v1 = vsel %vm1146_vm10, %v995_v16, %v215_v5  ;;  %v355_v22 = vsel %vm722_vm11, 0, %v721_v6 }
  0x68   :  { %v220_v8 = vmul.f32 %v218_v1, %v218_v1  ;;  %v356_v41 = vsub.s32 32, %v355_v22  ;;  %v357_v51 = vshll.u32 %v348_v47, %v355_v22  ;;  %v360_v13 = vsub.s32 4294967266, %v355_v22 }
  0x6a   :  { %v221_v11 = vmul.f32 -0.001358992, %v220_v8  ;;  %v228_v49 = vmul.f32 -0.00019511016, %v220_v8  ;;  %v358_v29 = vshrl.u32 %v340_v9, %v356_v41  ;;  %v361_v19 = vadd.s32 127, %v360_v13 }
  0x6c   :  { %v222_v60 = vadd.f32 0.041655596, %v221_v11  ;;  %v229_v14 = vadd.f32 0.008332121, %v228_v49  ;;  %v359_v61 = vor.u32 %v358_v29, %v357_v51  ;;  %v362_v21 = vshll.u32 %v361_v19, 23 }
  0x6e   :  { %v223_v17 = vmul.f32 %v222_v60, %v220_v8  ;;  %v230_v18 = vmul.f32 %v229_v14, %v220_v8  ;;  %v363_v28 = vor.u32 4788187, %v362_v21  ;;  %v366_v31 = vcvt.s32.f32 %v359_v61 }
  0x70   :  { %v224_v23 = vadd.f32 -0.4999988, %v223_v17  ;;  %v231_v30 = vadd.f32 -0.16666654, %v230_v18  ;;  %v364_v39 = vand.u32 2147483647, %v363_v28 }
  0x72   :  { %v225_v33 = vmul.f32 %v224_v23, %v220_v8  ;;  %v232_v34 = vmul.f32 %v231_v30, %v220_v8  ;;  %v367_v36 = vmul.f32 %v366_v31, %v364_v39  ;;  %v390_v8 = vand.u32 3, %v373_v4 }
  0x74   :  { %v226_v42 = vadd.f32 1.0, %v225_v33  ;;  %v233_v44 = vadd.f32 1.0, %v232_v34  ;;  %v368_v46 = vxor.u32 2147483648, %v367_v36  ;;  %vm395_vm3 = vcmp.eq.s32.totalorder %v390_v8, 2 }
  0x75   :  { %vm392_vm4 = vcmp.eq.s32.totalorder %v390_v8, 0  ;;  %vm391_vm5 = vcmp.lt.s32.totalorder %v390_v8, 2 }
  0x76   :  { %v234_v45 = vmul.f32 %v233_v44, %v218_v1  ;;  %v242_v10 = vxor.u32 2147483648, %v226_v42  ;;  %v369_v56 = vsel %vm248_vm13, %v368_v46, %v367_v36 }
  0x77   :  { %v372_v24 = vsel %vm1165_vm15, %v997_v20, %v369_v56 }
  0x78   :  { %v239_v48 = vxor.u32 2147483648, %v234_v45  ;;  %v243_v50 = vsel %vm241_vm12, %v242_v10, %v234_v45  ;;  %v374_v62 = vmul.f32 %v372_v24, %v372_v24 }
  0x7a   :  { %v240_v47 = vsel %vm238_vm14, %v226_v42, %v239_v48  ;;  %v375_v16 = vmul.f32 -0.001358992, %v374_v62  ;;  %v382_v0 = vmul.f32 -0.00019511016, %v374_v62 }
  0x7b   :  { %v244_v59 = vsel %vm237_vm1, %v240_v47, %v243_v50 }
  0x7c   :  { %v245_v63 = vsel %vm235_vm2, nan, %v244_v59  ;;  %v376_v2 = vadd.f32 0.041655596, %v375_v16  ;;  %v383_v3 = vadd.f32 0.008332121, %v382_v0 }
  0x7d   :  { %727 = vmatmul.msk.f32.vlgmr.msra.gmra.mxu2 %vm406_vm0, %v245_v63  ;;  %729 = vmatmul.msk.f32.vlgmr.msra.gmra.mxu3 %vm406_vm0, %v245_v63 }
  0x7e   :  { %725 = vmatmul.msk.f32.vlgmr.msrb.gmra.mxu1 %vm406_vm0, %v245_v63  ;;  %731 = vmatmul.msk.f32.vlgmr.msrb.gmra.mxu0 %vm406_vm0, %v245_v63  ;;  %v377_v5 = vmul.f32 %v376_v2, %v374_v62  ;;  %v384_v6 = vmul.f32 %v383_v3, %v374_v62 }
  0x80   :  { %v378_v43 = vadd.f32 -0.4999988, %v377_v5  ;;  %v385_v1 = vadd.f32 -0.16666654, %v384_v6 }
  0x82   :  { %v379_v9 = vmul.f32 %v378_v43, %v374_v62  ;;  %v386_v22 = vmul.f32 %v385_v1, %v374_v62 }
  0x84   :  { %v380_v11 = vadd.f32 1.0, %v379_v9  ;;  %v387_v49 = vadd.f32 1.0, %v386_v22 }
  0x86   :  { %v388_v41 = vmul.f32 %v387_v49, %v372_v24  ;;  %v396_v51 = vxor.u32 2147483648, %v380_v11 }
  0x88   :  { %v393_v38 = vxor.u32 2147483648, %v388_v41  ;;  %v397_v12 = vsel %vm395_vm3, %v396_v51, %v388_v41 }
  0x8a   :  { %v394_v13 = vsel %vm392_vm4, %v380_v11, %v393_v38 }
  0x8b   :  { %v398_v60 = vsel %vm391_vm5, %v394_v13, %v397_v12 }
  0x8c   :  { %v399_v14 = vsel %vm389_vm6, nan, %v398_v60 }
  0x8d   :  { %728 = vmatmul.msk.f32.gmra.mxu2 %vm406_vm0, %v399_v14  ;;  %730 = vmatmul.msk.f32.gmra.mxu3 %vm406_vm0, %v399_v14 }
  0x8e   :  { %726 = vmatmul.msk.f32.gmra.mxu1 %vm406_vm0, %v399_v14  ;;  %732 = vmatmul.msk.f32.gmra.mxu0 %vm406_vm0, %v399_v14 }
  0x95   :  { %735 = vmatmul.msk.f32.vlgmr.msrb.gmra.mxu2 %vm406_vm0, %v245_v63  ;;  %737 = vmatmul.msk.f32.vlgmr.msrb.gmra.mxu3 %vm406_vm0, %v245_v63 }
  0x96   :  { %733 = vmatmul.msk.f32.vlgmr.msra.gmra.mxu1 %vm406_vm0, %v245_v63  ;;  %739 = vmatmul.msk.f32.vlgmr.msra.gmra.mxu0 %vm406_vm0, %v245_v63 }
  0x9a   :  { %v430_v29 = vpop.f32.mrf.mxu0  ;;  %v433_v19 = vpop.f32.mrf.mxu1 }
  0x9b   :  { %v436_v20 = vmul.f32 %v430_v29, %v245_v63  ;;  %v437_v40 = vmul.f32 %v433_v19, %v399_v14 }
  0x9d   :  { %438 = vst.msk [vmem:[#allocation12] sm:$0xff] %vm406_vm0, %v436_v20  ;;  %736 = vmatmul.msk.f32.gmra.mxu2 %vm406_vm0, %v399_v14  ;;  %738 = vmatmul.msk.f32.gmra.mxu3 %vm406_vm0, %v399_v14 }
  0x9e   :  { %439 = vst.msk [vmem:[#allocation12 + $0x8] sm:$0xff] %vm406_vm0, %v437_v40  ;;  %734 = vmatmul.msk.f32.gmra.mxu1 %vm406_vm0, %v399_v14  ;;  %740 = vmatmul.msk.f32.gmra.mxu0 %vm406_vm0, %v399_v14 }
  0x9f   :  { %690 = dma.vmem_to_hbm [thread:$0]  %s683_s19, 256, %s685_s22, [#allocation6], %s917_s29, %s917_s29, %s918_s30  }
  0xfb   :  { %v495_v17 = vpop.f32.mrf.mxu1  ;;  %v564_v18 = vpop.f32.mrf.mxu0 }
  0xfc   :  { %662 = vst [vmem:[#allocation13] sm:$0xff] %v495_v17 }
  0xfd   :  { %665 = vst [vmem:[#allocation13 + $0x18] sm:$0xff] %v564_v18 }
 0x100   :  { %v518_v61 = vpop.f32.mrf.mxu2  ;;  %v541_v21 = vpop.f32.mrf.mxu3 }
 0x101   :  { %663 = vst [vmem:[#allocation13 + $0x8] sm:$0xff] %v518_v61 }
 0x102   :  { %664 = vst [vmem:[#allocation13 + $0x10] sm:$0xff] %v541_v21 }
 0x10b   :  { %v498_v23 = vpop.f32.mrf.mxu1  ;;  %v567_v30 = vpop.f32.mrf.mxu0 }
 0x10c   :  { %670 = vst [vmem:[#allocation13 + $0x40] sm:$0xff] %v498_v23 }
 0x10d   :  { %673 = vst [vmem:[#allocation13 + $0x58] sm:$0xff] %v567_v30 }
 0x110   :  { %v521_v25 = vpop.f32.mrf.mxu2  ;;  %v544_v26 = vpop.f32.mrf.mxu3 }
 0x111   :  { %671 = vst [vmem:[#allocation13 + $0x48] sm:$0xff] %v521_v25 }
 0x112   :  { %672 = vst [vmem:[#allocation13 + $0x50] sm:$0xff] %v544_v26 }
 0x113   :  { %v587_v27 = vpop.f32.mrf.mxu1  ;;  %v656_v28 = vpop.f32.mrf.mxu0 }
 0x114   :  { %666 = vst [vmem:[#allocation13 + $0x20] sm:$0xff] %v587_v27 }
 0x115   :  { %669 = vst [vmem:[#allocation13 + $0x38] sm:$0xff] %v656_v28 }
 0x118   :  { %v610_v31 = vpop.f32.mrf.mxu2  ;;  %v633_v53 = vpop.f32.mrf.mxu3 }
 0x119   :  { %667 = vst [vmem:[#allocation13 + $0x28] sm:$0xff] %v610_v31 }
 0x11a   :  { %668 = vst [vmem:[#allocation13 + $0x30] sm:$0xff] %v633_v53 }
 0x11b   :  { %v590_v7 = vpop.f32.mrf.mxu1  ;;  %v659_v32 = vpop.f32.mrf.mxu0 }
 0x11c   :  { %674 = vst [vmem:[#allocation13 + $0x60] sm:$0xff] %v590_v7 }
 0x11d   :  { %677 = vst [vmem:[#allocation13 + $0x78] sm:$0xff] %v659_v32 }
 0x120   :  { %v613_v33 = vpop.f32.mrf.mxu2  ;;  %v636_v34 = vpop.f32.mrf.mxu3 }
 0x121   :  { %675 = vst [vmem:[#allocation13 + $0x68] sm:$0xff] %v613_v33 }
 0x122   :  { %676 = vst [vmem:[#allocation13 + $0x70] sm:$0xff] %v636_v34 }
 0x123   :  { %703 = dma.vmem_to_hbm [thread:$0]  %s696_s23, 2048, %s698_s26, [#allocation14], %s922_s16, %s922_s16, %s923_s17  }
 0x124   :  { %912 = dma.done.wait [#allocation6], 256  }
 0x125   :  { %913 = vsyncadd [#allocation6], 4294967040 }
 0x126   :  { %914 = dma.done.wait [#allocation14], 2048  }
 0x127   :  { %915 = vsyncadd [#allocation14], 4294965248 }
 0x128   :  { %712 = vsyncpa [#allocation5], 1 }
 0x129   :  { %713 = vsyncpa [#allocation8], 1 }
 0x12a   :  { %714 = vsyncpa [#allocation11], 1 }
 0x12b   :  { %715 = vsyncpa [#allocation6], 1 }
 0x12c   :  { %716 = vsyncpa [#allocation14], 1 }

</bundles_post_ra>
